<compile_context>
chip_gen: v6e
topology: v6e:2x2x1
jax: 0.10.0
libtpu: 0.0.40
codegen_flags: <defaults>
</compile_context>

<pallas_src>
import jax
import jax.numpy as jnp
from jax.experimental import pallas as pl
from jax.experimental.pallas import tpu as pltpu

_SUB = 16  # sublane granularity that keeps both bf16 (16,128) and f32 (8,128) tilings aligned


def _round_up(n, m):
    return ((n + m - 1) // m) * m


def rnn_classifier_kernel(x_ref, wih_ref, whh_ref, bh_ref, wfc_ref, bfc_ref, o_ref, pre_ref):
    """x_ref: (T, tile_b, I) time-major input block; weights stored (in, out).
    bh = b_ih + b_hh, shape (1, H) f32.  o_ref: (tile_b, O_pad) lane-dense output.
    pre_ref: (T, tile_b, H) f32 VMEM scratch holding the hoisted input projection."""
    T, tile_b, I = x_ref.shape
    H = whh_ref.shape[0]

    whh = whh_ref[...]  # (H, H) compute dtype, VMEM/vreg resident for the whole tile

    # ---- Hoisted input projection: x@W_ih has no sequential dependency, so do it as one
    # large matmul over all timesteps with the summed bias folded in once (instead of T tiny
    # K=I matmuls + T bias broadcasts inside the serial loop).
    x2d = x_ref[...].reshape(T * tile_b, I)            # tile-aligned leading-dim merge (tile_b % 16 == 0)
    pre2d = jnp.dot(x2d, wih_ref[...], preferred_element_type=jnp.float32) + bh_ref[...]
    pre_ref[...] = pre2d.reshape(T, tile_b, H)         # (T, tile_b, H) f32

    # ---- Serial recurrence: per-step critical path is h@W_hh (MXU) + pre[t] (VPU)
    # -> tanh (EUP, f32 -> v5e-safe) -> bf16 cast.  Partial unroll lets the scheduler
    # overlap MXU push / tanh / cast across steps without full-unroll blowup at large T.
    def step(t, h):
        pre_t = pre_ref[t]                             # (tile_b, H) f32, leading-dim dynamic slice
        h_new = jnp.tanh(pre_t + jnp.dot(h, whh, preferred_element_type=jnp.float32))
        return h_new.astype(whh.dtype)                 # bf16 carry: only ever consumed by bf16 matmuls

    h0 = jnp.zeros((tile_b, H), whh.dtype)
    h_last = jax.lax.fori_loop(0, T, step, h0, unroll=min(T, 8))

    # Dropout is identity at inference; classifier head on the final hidden state.
    logits = jnp.dot(h_last, wfc_ref[...], preferred_element_type=jnp.float32) + bfc_ref[...]
    o_ref[...] = logits.astype(o_ref.dtype)            # full 128-lane-multiple store (no vst.msk)


def rnn_classifier_forward(x, params, *, tile_b=256, compute_dtype=jnp.bfloat16):
    """x: (B, T, input_size) float32. Returns (B, output_size) float32 (eval-mode forward)."""
    B, T, I = x.shape
    H = params["w_hh"].shape[0]
    O = params["w_fc"].shape[1]
    O_pad = _round_up(max(O, 128), 128)
    itemsize = jnp.dtype(compute_dtype).itemsize

    # ---- Batch tiling --------------------------------------------------------
    B_g = _round_up(B, _SUB)
    tile_b = _round_up(min(tile_b, B_g), _SUB)
    # v7x megacore: with enough batch, keep at least 2 tiles so both TensorCores get work.
    if B_g >= 2 * _SUB:
        tile_b = min(tile_b, _round_up(pl.cdiv(B_g, 2), _SUB))
    # vreg-pressure guard: keep the per-step live set (carry + pre slice) from spilling
    # when H is large and the recurrence is partially unrolled.
    if H >= 128:
        tile_b = min(tile_b, 128)

    # VMEM footprint per grid step: double-buffered x block + pre scratch + out buffers.
    def _blk_bytes(tb):
        return 2 * T * tb * I * itemsize + T * tb * H * 4 + 2 * tb * O_pad * 4

    budget = 44 << 20                      # headroom inside v7x's 64 MiB physical VMEM
    while tile_b > _SUB and _blk_bytes(tile_b) > budget:
        tile_b = _round_up(tile_b // 2, _SUB)
    # TODO(synk): for very long sequences add a time-chunk grid axis ("arbitrary", h carried
    #             in VMEM scratch) so VMEM is bounded independent of T instead of shrinking tile_b.

    B_pad = _round_up(B, tile_b)
    n_tiles = B_pad // tile_b

    # (B, T, I) -> (T, B_pad, I): time-major so every recurrence step is a clean leading-dim
    # slice; the bf16 cast fuses into this relayout.
    # TODO(synk): fold this relayout into the hoisted projection (einsum 'bti,ih->tbh') to
    #             drop one extra HBM pass over x for production-sized inputs.
    x_p = jnp.pad(x, ((0, B_pad - B), (0, 0), (0, 0)))
    x_tbi = jnp.transpose(x_p, (1, 0, 2)).astype(compute_dtype)

    w_ih = params["w_ih"].astype(compute_dtype)                    # (I, H)
    w_hh = params["w_hh"].astype(compute_dtype)                    # (H, H)
    b_h = (params["b_ih"] + params["b_hh"]).astype(jnp.float32)    # (1, H)
    w_fc = jnp.pad(params["w_fc"], ((0, 0), (0, O_pad - O))).astype(compute_dtype)
    b_fc = jnp.pad(params["b_fc"], ((0, 0), (0, O_pad - O))).astype(jnp.float32)

    def whole(arr):
        # Grid-invariant parameter: constant index_map -> DMA'd once, VMEM-resident.
        # TODO(synk): pipeline_mode=pl.Buffered(1) would drop the duplicate buffer at
        #             production-sized H; negligible at these sizes.
        return pl.BlockSpec(arr.shape, lambda i: (0, 0))

    in_specs = [
        pl.BlockSpec((T, tile_b, I), lambda i: (0, i, 0)),
        whole(w_ih), whole(w_hh), whole(b_h), whole(w_fc), whole(b_fc),
    ]
    out_spec = pl.BlockSpec((tile_b, O_pad), lambda i: (i, 0))

    weight_bytes = ((w_ih.size + w_hh.size + w_fc.size) * itemsize
                    + (b_h.size + b_fc.size) * 4)
    # VMEM limit sized for the actual 2-deep pipeline, capped near physical VMEM (not 32 MiB).
    vmem_limit = int(min(max(_blk_bytes(tile_b) + 2 * weight_bytes + (4 << 20), 8 << 20),
                         100 << 20))

    cost = pl.CostEstimate(
        flops=int(2 * B_pad * T * (I * H + H * H) + 2 * B_pad * H * O_pad),
        transcendentals=int(B_pad * T * H),
        bytes_accessed=int(x_tbi.size * itemsize + weight_bytes + B_pad * O_pad * 4),
    )

    out = pl.pallas_call(
        rnn_classifier_kernel,
        out_shape=jax.ShapeDtypeStruct((B_pad, O_pad), jnp.float32),
        grid_spec=pltpu.PrefetchScalarGridSpec(
            num_scalar_prefetch=0,
            grid=(n_tiles,),
            in_specs=in_specs,
            out_specs=out_spec,
            scratch_shapes=[pltpu.VMEM((T, tile_b, H), jnp.float32)],
        ),
        compiler_params=pltpu.CompilerParams(
            dimension_semantics=("parallel",),   # batch tiles shard across TCs (v7x megacore)
            vmem_limit_bytes=vmem_limit,
        ),
        cost_estimate=cost,
    )(x_tbi, w_ih, w_hh, b_h, w_fc, b_fc)

    return out[:B, :O]


def init_params(key, input_size, hidden_size, output_size):
    """Deterministic init mirroring nn.RNN / nn.Linear shapes (weights stored as (in, out))."""
    def uniform(k, shape, bound):
        return jax.random.uniform(k, shape, jnp.float32, -bound, bound)

    bound = 1.0 / float(hidden_size) ** 0.5
    key, k1, k2, k3, k4, k5, k6 = jax.random.split(key, 7)
    return {
        "w_ih": uniform(k1, (input_size, hidden_size), bound),
        "w_hh": uniform(k2, (hidden_size, hidden_size), bound),
        "b_ih": uniform(k3, (1, hidden_size), bound),
        "b_hh": uniform(k4, (1, hidden_size), bound),
        "w_fc": uniform(k5, (hidden_size, output_size), bound),
        "b_fc": uniform(k6, (1, output_size), bound),
    }


def rnn_classifier_reference(x, params):
    """Pure-JAX f32 reference of RNNClassifier.forward (eval mode: dropout = identity)."""
    B, T, _ = x.shape
    H = params["w_hh"].shape[0]
    h = jnp.zeros((B, H), jnp.float32)
    for t in range(T):
        h = jnp.tanh(x[:, t, :] @ params["w_ih"] + params["b_ih"]
                     + h @ params["w_hh"] + params["b_hh"])
    return h @ params["w_fc"] + params["b_fc"]


if __name__ == "__main__":
    key = jax.random.PRNGKey(0)
    batch, seq_len, input_size, hidden_size, output_size = 8, 8, 32, 32, 16

    key, kx = jax.random.split(key)
    x = jax.random.normal(kx, (batch, seq_len, input_size), jnp.float32)
    params = init_params(key, input_size, hidden_size, output_size)

    out = rnn_classifier_forward(x, params)          # bf16 matmuls, f32 accumulation
    out = jax.block_until_ready(out)

    ref = rnn_classifier_reference(x, params)
    assert out.shape == (batch, output_size)
    assert jnp.allclose(out, ref, atol=5e-2, rtol=5e-2), \
        float(jnp.max(jnp.abs(out - ref)))

    print("KERNEL_OK")
</pallas_src>

<mosaic_0001>
module attributes {stable_mosaic.version = 11 : i64} {
  func.func @rnn_classifier_kernel(%arg0: i32, %arg1: memref<8x16x32xbf16, #tpu.memory_space<vmem>>, %arg2: memref<32x32xbf16, #tpu.memory_space<vmem>>, %arg3: memref<32x32xbf16, #tpu.memory_space<vmem>>, %arg4: memref<1x32xf32, #tpu.memory_space<vmem>>, %arg5: memref<32x128xbf16, #tpu.memory_space<vmem>>, %arg6: memref<1x128xf32, #tpu.memory_space<vmem>>, %arg7: memref<16x128xf32, #tpu.memory_space<vmem>>, %arg8: memref<8x16x32xf32, #tpu.memory_space<vmem>>) attributes {dimension_semantics = [#tpu.dimension_semantics<parallel>], iteration_bounds = array<i64: 1>, scalar_prefetch = 0 : i64, scratch_operands = 1 : i64, tpu.core_type = #tpu.core_type<tc>, window_params = [{transform_indices = @transform_0, window_bounds = array<i64: 8, 16, 32>}, {pipeline_mode = #tpu.pipeline_mode<synchronous>, transform_indices = @transform_1, window_bounds = array<i64: 32, 32>}, {pipeline_mode = #tpu.pipeline_mode<synchronous>, transform_indices = @transform_2, window_bounds = array<i64: 32, 32>}, {pipeline_mode = #tpu.pipeline_mode<synchronous>, transform_indices = @transform_3, window_bounds = array<i64: 1, 32>}, {pipeline_mode = #tpu.pipeline_mode<synchronous>, transform_indices = @transform_4, window_bounds = array<i64: 32, 128>}, {pipeline_mode = #tpu.pipeline_mode<synchronous>, transform_indices = @transform_5, window_bounds = array<i64: 1, 128>}, {transform_indices = @transform_6, window_bounds = array<i64: 16, 128>}]} {
    %c0 = arith.constant 0 : index
    %c0_0 = arith.constant 0 : index
    %0 = vector.load %arg3[%c0, %c0_0] : memref<32x32xbf16, #tpu.memory_space<vmem>>, vector<32x32xbf16>
    %c0_1 = arith.constant 0 : index
    %c0_2 = arith.constant 0 : index
    %c0_3 = arith.constant 0 : index
    %1 = vector.load %arg1[%c0_1, %c0_2, %c0_3] : memref<8x16x32xbf16, #tpu.memory_space<vmem>>, vector<8x16x32xbf16>
    %2 = vector.shape_cast %1 : vector<8x16x32xbf16> to vector<128x32xbf16>
    %c0_4 = arith.constant 0 : index
    %c0_5 = arith.constant 0 : index
    %3 = vector.load %arg2[%c0_4, %c0_5] : memref<32x32xbf16, #tpu.memory_space<vmem>>, vector<32x32xbf16>
    %cst = arith.constant dense<0.000000e+00> : vector<128x32xf32>
    %4 = tpu.matmul %2, %3, %cst {dimension_numbers = #tpu.dot_dimension_numbers<[1], [0], [0], [1], [0, 0, 1, 1], [], []>} : vector<128x32xbf16>, vector<32x32xbf16>, vector<128x32xf32> -> vector<128x32xf32>
    %c0_6 = arith.constant 0 : index
    %c0_7 = arith.constant 0 : index
    %5 = vector.load %arg4[%c0_6, %c0_7] : memref<1x32xf32, #tpu.memory_space<vmem>>, vector<1x32xf32>
    %6 = vector.broadcast %5 : vector<1x32xf32> to vector<128x32xf32>
    %7 = arith.addf %4, %6 : vector<128x32xf32>
    %8 = vector.shape_cast %7 : vector<128x32xf32> to vector<8x16x32xf32>
    %c0_8 = arith.constant 0 : index
    %c0_9 = arith.constant 0 : index
    %c0_10 = arith.constant 0 : index
    %9 = vector.load %arg8[%c0_8, %c0_9, %c0_10] : memref<8x16x32xf32, #tpu.memory_space<vmem>>, vector<8x16x32xf32>
    tpu.vector_store %arg8[%c0_8, %c0_9, %c0_10], %8 {strides = array<i32>} : memref<8x16x32xf32, #tpu.memory_space<vmem>>, vector<8x16x32xf32>,
    %cst_11 = arith.constant 0.000000e+00 : bf16
    %10 = vector.broadcast %cst_11 : bf16 to vector<16x32xbf16>
    %c0_i32 = arith.constant 0 : i32
    %11 = arith.index_cast %c0_i32 : i32 to index
    %c0_12 = arith.constant 0 : index
    %c0_13 = arith.constant 0 : index
    %12 = vector.load %arg8[%11, %c0_12, %c0_13] : memref<8x16x32xf32, #tpu.memory_space<vmem>>, vector<1x16x32xf32>
    %13 = vector.shape_cast %12 : vector<1x16x32xf32> to vector<16x32xf32>
    %cst_14 = arith.constant dense<0.000000e+00> : vector<16x32xf32>
    %14 = tpu.matmul %10, %0, %cst_14 {dimension_numbers = #tpu.dot_dimension_numbers<[1], [0], [0], [1], [0, 0, 1, 1], [], []>} : vector<16x32xbf16>, vector<32x32xbf16>, vector<16x32xf32> -> vector<16x32xf32>
    %15 = arith.addf %13, %14 : vector<16x32xf32>
    %16 = math.tanh %15 : vector<16x32xf32>
    %17 = arith.truncf %16 : vector<16x32xf32> to vector<16x32xbf16>
    %c1_i32 = arith.constant 1 : i32
    %18 = arith.index_cast %c1_i32 : i32 to index
    %c0_15 = arith.constant 0 : index
    %c0_16 = arith.constant 0 : index
    %19 = vector.load %arg8[%18, %c0_15, %c0_16] : memref<8x16x32xf32, #tpu.memory_space<vmem>>, vector<1x16x32xf32>
    %20 = vector.shape_cast %19 : vector<1x16x32xf32> to vector<16x32xf32>
    %cst_17 = arith.constant dense<0.000000e+00> : vector<16x32xf32>
    %21 = tpu.matmul %17, %0, %cst_17 {dimension_numbers = #tpu.dot_dimension_numbers<[1], [0], [0], [1], [0, 0, 1, 1], [], []>} : vector<16x32xbf16>, vector<32x32xbf16>, vector<16x32xf32> -> vector<16x32xf32>
    %22 = arith.addf %20, %21 : vector<16x32xf32>
    %23 = math.tanh %22 : vector<16x32xf32>
    %24 = arith.truncf %23 : vector<16x32xf32> to vector<16x32xbf16>
    %c2_i32 = arith.constant 2 : i32
    %25 = arith.index_cast %c2_i32 : i32 to index
    %c0_18 = arith.constant 0 : index
    %c0_19 = arith.constant 0 : index
    %26 = vector.load %arg8[%25, %c0_18, %c0_19] : memref<8x16x32xf32, #tpu.memory_space<vmem>>, vector<1x16x32xf32>
    %27 = vector.shape_cast %26 : vector<1x16x32xf32> to vector<16x32xf32>
    %cst_20 = arith.constant dense<0.000000e+00> : vector<16x32xf32>
    %28 = tpu.matmul %24, %0, %cst_20 {dimension_numbers = #tpu.dot_dimension_numbers<[1], [0], [0], [1], [0, 0, 1, 1], [], []>} : vector<16x32xbf16>, vector<32x32xbf16>, vector<16x32xf32> -> vector<16x32xf32>
    %29 = arith.addf %27, %28 : vector<16x32xf32>
    %30 = math.tanh %29 : vector<16x32xf32>
    %31 = arith.truncf %30 : vector<16x32xf32> to vector<16x32xbf16>
    %c3_i32 = arith.constant 3 : i32
    %32 = arith.index_cast %c3_i32 : i32 to index
    %c0_21 = arith.constant 0 : index
    %c0_22 = arith.constant 0 : index
    %33 = vector.load %arg8[%32, %c0_21, %c0_22] : memref<8x16x32xf32, #tpu.memory_space<vmem>>, vector<1x16x32xf32>
    %34 = vector.shape_cast %33 : vector<1x16x32xf32> to vector<16x32xf32>
    %cst_23 = arith.constant dense<0.000000e+00> : vector<16x32xf32>
    %35 = tpu.matmul %31, %0, %cst_23 {dimension_numbers = #tpu.dot_dimension_numbers<[1], [0], [0], [1], [0, 0, 1, 1], [], []>} : vector<16x32xbf16>, vector<32x32xbf16>, vector<16x32xf32> -> vector<16x32xf32>
    %36 = arith.addf %34, %35 : vector<16x32xf32>
    %37 = math.tanh %36 : vector<16x32xf32>
    %38 = arith.truncf %37 : vector<16x32xf32> to vector<16x32xbf16>
    %c4_i32 = arith.constant 4 : i32
    %39 = arith.index_cast %c4_i32 : i32 to index
    %c0_24 = arith.constant 0 : index
    %c0_25 = arith.constant 0 : index
    %40 = vector.load %arg8[%39, %c0_24, %c0_25] : memref<8x16x32xf32, #tpu.memory_space<vmem>>, vector<1x16x32xf32>
    %41 = vector.shape_cast %40 : vector<1x16x32xf32> to vector<16x32xf32>
    %cst_26 = arith.constant dense<0.000000e+00> : vector<16x32xf32>
    %42 = tpu.matmul %38, %0, %cst_26 {dimension_numbers = #tpu.dot_dimension_numbers<[1], [0], [0], [1], [0, 0, 1, 1], [], []>} : vector<16x32xbf16>, vector<32x32xbf16>, vector<16x32xf32> -> vector<16x32xf32>
    %43 = arith.addf %41, %42 : vector<16x32xf32>
    %44 = math.tanh %43 : vector<16x32xf32>
    %45 = arith.truncf %44 : vector<16x32xf32> to vector<16x32xbf16>
    %c5_i32 = arith.constant 5 : i32
    %46 = arith.index_cast %c5_i32 : i32 to index
    %c0_27 = arith.constant 0 : index
    %c0_28 = arith.constant 0 : index
    %47 = vector.load %arg8[%46, %c0_27, %c0_28] : memref<8x16x32xf32, #tpu.memory_space<vmem>>, vector<1x16x32xf32>
    %48 = vector.shape_cast %47 : vector<1x16x32xf32> to vector<16x32xf32>
    %cst_29 = arith.constant dense<0.000000e+00> : vector<16x32xf32>
    %49 = tpu.matmul %45, %0, %cst_29 {dimension_numbers = #tpu.dot_dimension_numbers<[1], [0], [0], [1], [0, 0, 1, 1], [], []>} : vector<16x32xbf16>, vector<32x32xbf16>, vector<16x32xf32> -> vector<16x32xf32>
    %50 = arith.addf %48, %49 : vector<16x32xf32>
    %51 = math.tanh %50 : vector<16x32xf32>
    %52 = arith.truncf %51 : vector<16x32xf32> to vector<16x32xbf16>
    %c6_i32 = arith.constant 6 : i32
    %53 = arith.index_cast %c6_i32 : i32 to index
    %c0_30 = arith.constant 0 : index
    %c0_31 = arith.constant 0 : index
    %54 = vector.load %arg8[%53, %c0_30, %c0_31] : memref<8x16x32xf32, #tpu.memory_space<vmem>>, vector<1x16x32xf32>
    %55 = vector.shape_cast %54 : vector<1x16x32xf32> to vector<16x32xf32>
    %cst_32 = arith.constant dense<0.000000e+00> : vector<16x32xf32>
    %56 = tpu.matmul %52, %0, %cst_32 {dimension_numbers = #tpu.dot_dimension_numbers<[1], [0], [0], [1], [0, 0, 1, 1], [], []>} : vector<16x32xbf16>, vector<32x32xbf16>, vector<16x32xf32> -> vector<16x32xf32>
    %57 = arith.addf %55, %56 : vector<16x32xf32>
    %58 = math.tanh %57 : vector<16x32xf32>
    %59 = arith.truncf %58 : vector<16x32xf32> to vector<16x32xbf16>
    %c7_i32 = arith.constant 7 : i32
    %60 = arith.index_cast %c7_i32 : i32 to index
    %c0_33 = arith.constant 0 : index
    %c0_34 = arith.constant 0 : index
    %61 = vector.load %arg8[%60, %c0_33, %c0_34] : memref<8x16x32xf32, #tpu.memory_space<vmem>>, vector<1x16x32xf32>
    %62 = vector.shape_cast %61 : vector<1x16x32xf32> to vector<16x32xf32>
    %cst_35 = arith.constant dense<0.000000e+00> : vector<16x32xf32>
    %63 = tpu.matmul %59, %0, %cst_35 {dimension_numbers = #tpu.dot_dimension_numbers<[1], [0], [0], [1], [0, 0, 1, 1], [], []>} : vector<16x32xbf16>, vector<32x32xbf16>, vector<16x32xf32> -> vector<16x32xf32>
    %64 = arith.addf %62, %63 : vector<16x32xf32>
    %65 = math.tanh %64 : vector<16x32xf32>
    %66 = arith.truncf %65 : vector<16x32xf32> to vector<16x32xbf16>
    %c8_i32 = arith.constant 8 : i32
    %c0_36 = arith.constant 0 : index
    %c0_37 = arith.constant 0 : index
    %67 = vector.load %arg5[%c0_36, %c0_37] : memref<32x128xbf16, #tpu.memory_space<vmem>>, vector<32x128xbf16>
    %cst_38 = arith.constant dense<0.000000e+00> : vector<16x128xf32>
    %68 = tpu.matmul %66, %67, %cst_38 {dimension_numbers = #tpu.dot_dimension_numbers<[1], [0], [0], [1], [0, 0, 1, 1], [], []>} : vector<16x32xbf16>, vector<32x128xbf16>, vector<16x128xf32> -> vector<16x128xf32>
    %c0_39 = arith.constant 0 : index
    %c0_40 = arith.constant 0 : index
    %69 = vector.load %arg6[%c0_39, %c0_40] : memref<1x128xf32, #tpu.memory_space<vmem>>, vector<1x128xf32>
    %70 = vector.broadcast %69 : vector<1x128xf32> to vector<16x128xf32>
    %71 = arith.addf %68, %70 : vector<16x128xf32>
    %c0_41 = arith.constant 0 : index
    %c0_42 = arith.constant 0 : index
    %72 = vector.load %arg7[%c0_41, %c0_42] : memref<16x128xf32, #tpu.memory_space<vmem>>, vector<16x128xf32>
    tpu.vector_store %arg7[%c0_41, %c0_42], %71 {strides = array<i32>} : memref<16x128xf32, #tpu.memory_space<vmem>>, vector<16x128xf32>,
    return
  }
  func.func @transform_0(%arg0: i32) -> (i32, i32, i32) {
    %c0_i32 = arith.constant 0 : i32
    %c0_i32_0 = arith.constant 0 : i32
    %c0_i32_1 = arith.constant 0 : i32
    return %c0_i32, %arg0, %c0_i32_0 : i32, i32, i32
  }
  func.func @transform_1(%arg0: i32) -> (i32, i32) {
    %c0_i32 = arith.constant 0 : i32
    %c0_i32_0 = arith.constant 0 : i32
    %c0_i32_1 = arith.constant 0 : i32
    return %c0_i32, %c0_i32_0 : i32, i32
  }
  func.func @transform_2(%arg0: i32) -> (i32, i32) {
    %c0_i32 = arith.constant 0 : i32
    %c0_i32_0 = arith.constant 0 : i32
    %c0_i32_1 = arith.constant 0 : i32
    return %c0_i32, %c0_i32_0 : i32, i32
  }
  func.func @transform_3(%arg0: i32) -> (i32, i32) {
    %c0_i32 = arith.constant 0 : i32
    %c0_i32_0 = arith.constant 0 : i32
    %c0_i32_1 = arith.constant 0 : i32
    return %c0_i32, %c0_i32_0 : i32, i32
  }
  func.func @transform_4(%arg0: i32) -> (i32, i32) {
    %c0_i32 = arith.constant 0 : i32
    %c0_i32_0 = arith.constant 0 : i32
    %c0_i32_1 = arith.constant 0 : i32
    return %c0_i32, %c0_i32_0 : i32, i32
  }
  func.func @transform_5(%arg0: i32) -> (i32, i32) {
    %c0_i32 = arith.constant 0 : i32
    %c0_i32_0 = arith.constant 0 : i32
    %c0_i32_1 = arith.constant 0 : i32
    return %c0_i32, %c0_i32_0 : i32, i32
  }
  func.func @transform_6(%arg0: i32) -> (i32, i32) {
    %c0_i32 = arith.constant 0 : i32
    %c0_i32_0 = arith.constant 0 : i32
    return %arg0, %c0_i32 : i32, i32
  }
}

</mosaic_0001>

<bundles_post_ra>
// kernel: tpu_custom_call.1
= control target key start
LH: loop header
LB: loop body
LE: loop exit
PB: predicated region body
PF: predicated region fallthrough
CT: control target
= control target key end

     0   :  { %11 = vsyncpa [#allocation4], 0  ;;  %s1329_s0 = inlined_call_operand.hbm [shape: bf16[8,16,32], index: 0, kind: input, shape index: {}]   ;;  %s1330_s1 = inlined_call_operand.hbm [shape: bf16[32,32], index: 1, kind: input, shape index: {}]   ;;  %s1331_s2 = inlined_call_operand.hbm [shape: bf16[32,32], index: 2, kind: input, shape index: {}]   ;;  %s1332_s3 = inlined_call_operand.vmem [shape: f32[1,32], index: 3, kind: input, shape index: {}]   ;;  %s1333_s4 = inlined_call_operand.hbm [shape: bf16[32,128], index: 4, kind: input, shape index: {}]   ;;  %s1334_s5 = inlined_call_operand.vmem [shape: f32[1,128], index: 5, kind: input, shape index: {}]   ;;  %s1335_s6 = inlined_call_operand.hbm [shape: f32[16,128], index: 6, kind: output, shape index: {}]  }
   0x1   :  { %12 = vsyncpa [#allocation7], 0 }
   0x2   :  { %13 = vsyncpa [#allocation10], 0 }
   0x3   :  { %14 = vsyncpa [#allocation5], 0  ;;  %s1143_s21 = smov [#allocation6]   ;;  %s1144_s23 = smov [#allocation3]  }
   0x4   :  { %s32_s22 = sshll.u32 %s1143_s21, 4  ;;  %s20_s24 = sshll.u32 %s1144_s23, 4  ;;  %s33_s22 = int_to_ptr.vmem [resolvable:$true] %s32_s22  ;;  %s21_s24 = int_to_ptr.vmem [resolvable:$true] %s20_s24 }
   0x5   :  { %s1043_s25 = scalar_lea.vmem %s33_s22, 256  ;;  %p1048_p1 = scmp.lt.s32.totalorder %s33_s22, %s33_s22 }
   0x6   :  { %p1044_p0 = scmp.ne.s32.totalorder %s33_s22, %s1043_s25  ;;  %p1049_p2 = scmp.lt.s32.totalorder %s1043_s25, %s1043_s25 }
   0x8   :  { %p1050_p3 = por %p1049_p2, %p1048_p1 }
   0xa   :  { %p1051_p4 = pnand %p1050_p3, %p1044_p0 }
   0xc   :  { %1054 = shalt.err (!%p1051_p4)
}
   0xd   :  { %s1145_s26 = smov 64   ;;  %s1146_s27 = smov 4  }
   0xe   :  { %38 = dma.hbm_to_vmem [thread:$0]  %s1330_s1, 256, %s33_s22, [#allocation7], %s1145_s26, %s1145_s26, %s1146_s27  }
   0xf   :  { %s1063_s30 = scalar_lea.vmem %s21_s24, 1024  ;;  %p1068_p6 = scmp.lt.s32.totalorder %s21_s24, %s21_s24 }
  0x10   :  { %p1064_p5 = scmp.ne.s32.totalorder %s21_s24, %s1063_s30  ;;  %p1069_p7 = scmp.lt.s32.totalorder %s1063_s30, %s1063_s30 }
  0x12   :  { %p1070_p8 = por %p1069_p7, %p1068_p6 }
  0x14   :  { %p1071_p9 = pnand %p1070_p8, %p1064_p5 }
  0x16   :  { %1074 = shalt.err (!%p1071_p9)
}
  0x17   :  { %26 = dma.hbm_to_vmem [thread:$0]  %s1329_s0, 1024, %s21_s24, [#allocation4], %s1145_s26, %s1145_s26, %s1146_s27  }
  0x18   :  { %s1147_s9 = smov [#allocation8]   ;;  %s1148_s11 = smov [#allocation9]  }
  0x19   :  { %s44_s10 = sshll.u32 %s1147_s9, 4  ;;  %s58_s12 = sshll.u32 %s1148_s11, 4  ;;  %s45_s10 = int_to_ptr.vmem [resolvable:$true] %s44_s10  ;;  %s59_s12 = int_to_ptr.vmem [resolvable:$true] %s58_s12 }
  0x1a   :  { %s1083_s1 = scalar_lea.vmem %s45_s10, 256  ;;  %p1088_p11 = scmp.lt.s32.totalorder %s45_s10, %s45_s10 }
  0x1b   :  { %p1084_p10 = scmp.ne.s32.totalorder %s45_s10, %s1083_s1  ;;  %p1089_p12 = scmp.lt.s32.totalorder %s1083_s1, %s1083_s1 }
  0x1d   :  { %p1090_p13 = por %p1089_p12, %p1088_p11 }
  0x1f   :  { %p1091_p0 = pnand %p1090_p13, %p1084_p10 }
  0x21   :  { %1094 = shalt.err (!%p1091_p0)
}
  0x22   :  { %50 = dma.hbm_to_vmem [thread:$0]  %s1331_s2, 256, %s45_s10, [#allocation7], %s1145_s26, %s1145_s26, %s1146_s27  }
  0x23   :  { %s1103_s0 = scalar_lea.vmem %s59_s12, 256  ;;  %p1108_p2 = scmp.lt.s32.totalorder %s59_s12, %s59_s12 }
  0x24   :  { %p1104_p1 = scmp.ne.s32.totalorder %s59_s12, %s1103_s0  ;;  %p1109_p3 = scmp.lt.s32.totalorder %s1103_s0, %s1103_s0 }
  0x26   :  { %p1110_p4 = por %p1109_p3, %p1108_p2 }
  0x28   :  { %p1111_p5 = pnand %p1110_p4, %p1104_p1 }
  0x2a   :  { %1114 = shalt.err (!%p1111_p5)
}
  0x2b   :  { %64 = dma.hbm_to_vmem [thread:$0]  %s1333_s4, 256, %s59_s12, [#allocation10], %s1145_s26, %s1145_s26, %s1146_s27  }
  0x2c   :  { %1135 = dma.done.wait [#allocation4], 1024  }
  0x2d   :  { %1136 = vsyncadd [#allocation4], 4294966272 }
  0x2e   :  { %1137 = dma.done.wait [#allocation7], 512  }
  0x2f   :  { %1138 = vsyncadd [#allocation7], 4294966784 }
  0x30   :  { %1139 = dma.done.wait [#allocation10], 256  }
  0x31   :  { %1140 = vsyncadd [#allocation10], 4294967040  ;;  %v1149_v0 = vmov 0.0   ;;  %vm1150_vm0 = vmmov 0   ;;  %v989_v1 = vld [vmem:[#allocation6 + $0x8] sm:$0xff]   ;;  %v990_v2 = vld [vmem:[#allocation6] sm:$0xff]  }
  0x32   :  { %905 = vmatprep.subr.bf16.mxu1 %v1149_v0  ;;  %909 = vmatprep.mubr.msk.bf16.mxu1 %vm1150_vm0, %v1149_v0  ;;  %vm163_vm1 = vcmask 261120   ;;  %v991_v3 = vld [vmem:[#allocation3] sm:$0xff]   ;;  %v1217_v4 = vld [vmem:[#allocation8 + $0x8] sm:$0xff]   ;;  %v993_v5 = vld [vmem:[#allocation3 + $0x8] sm:$0xff]   ;;  %v1151_v7 = vmov 0   ;;  %s1152_s18 = smov [#allocation11]  }
  0x33   :  { %885 = vmatprep.subr.bf16.mxu0 %v989_v1  ;;  %889 = vmatprep.mubr.msk.bf16.mxu0 %vm163_vm1, %v991_v3  ;;  %v1221_v6 = vld [vmem:[#allocation8] sm:$0xff]   ;;  %v1241_v8 = vld [vmem:[%s1332_s3] ss:$0 sm:$0xff]  ;;  %v996_v29 = vld [vmem:[#allocation3 + $0x18] sm:$0xff]   ;;  %s802_s19 = sshll.u32 %s1152_s18, 4  ;;  %s803_s19 = int_to_ptr.vmem [resolvable:$true] %s802_s19 }
  0x34   :  { %886 = vmatpush3.bf16.msra.mxu0 %v989_v1  ;;  %906 = vmatpush3.bf16.msra.mxu1 %v1217_v4  ;;  %v995_v28 = vld [vmem:[#allocation3 + $0x10] sm:$0xff]   ;;  %v997_v49 = vld [vmem:[#allocation3 + $0x20] sm:$0xff]   ;;  %v998_v61 = vld [vmem:[#allocation3 + $0x28] sm:$0xff]   ;;  %s1115_s20 = scalar_lea.vmem %s803_s19, 256  ;;  %p1120_p7 = scmp.lt.s32.totalorder %s803_s19, %s803_s19 }
  0x35   :  { %887 = vmatprep.subr.bf16.mxu0 %v990_v2  ;;  %907 = vmatprep.subr.bf16.mxu1 %v1149_v0  ;;  %v999_v62 = vld [vmem:[#allocation3 + $0x30] sm:$0xff]   ;;  %v1000_v63 = vld [vmem:[#allocation3 + $0x38] sm:$0xff]   ;;  %p1116_p6 = scmp.ne.s32.totalorder %s803_s19, %s1115_s20  ;;  %p1121_p8 = scmp.lt.s32.totalorder %s1115_s20, %s1115_s20 }
  0x37   :  { %p1122_p9 = por %p1121_p8, %p1120_p7 }
  0x38   :  { %888 = vmatpush3.bf16.msra.mxu0 %v990_v2  ;;  %908 = vmatpush3.bf16.msra.mxu1 %v1221_v6 }
  0x39   :  { %937 = vmatprep.subr.bf16.mxu0 %v1149_v0  ;;  %913 = vmatprep.subr.bf16.mxu1 %v1149_v0  ;;  %p1123_p10 = pnand %p1122_p9, %p1116_p6 }
  0x3b   :  { %890 = vmatmul.mubr.msk.bf16.vlgmr.msra.gmra.mxu0 %vm163_vm1, %v993_v5  ;;  %910 = vmatmul.mubr.bf16.vlgmr.msra.gmra.mxu1 %v1151_v7 }
  0x3c   :  { %938 = vmatpush3.bf16.msra.mxu0 %v1217_v4  ;;  %914 = vmatpush3.bf16.msra.mxu1 %v1217_v4 }
  0x3d   :  { %939 = vmatprep.subr.bf16.mxu0 %v1149_v0  ;;  %917 = vmatprep.mubr.msk.bf16.mxu1 %vm1150_vm0, %v1149_v0 }
  0x3e   :  { %915 = vmatprep.subr.bf16.mxu1 %v1149_v0  ;;  %893 = vmatprep.mubr.msk.bf16.mxu0 %vm163_vm1, %v995_v28 }
  0x40   :  { %940 = vmatpush3.bf16.msra.mxu0 %v1221_v6  ;;  %916 = vmatpush3.bf16.msra.mxu1 %v1221_v6 }
  0x41   :  { %953 = vmatprep.subr.bf16.mxu0 %v1149_v0  ;;  %921 = vmatprep.subr.bf16.mxu1 %v1149_v0 }
  0x43   :  { %894 = vmatmul.mubr.msk.bf16.gmra.mxu0 %vm163_vm1, %v996_v29 }
  0x44   :  { %897 = vmatprep.mubr.msk.bf16.mxu0 %vm163_vm1, %v997_v49 }
  0x4b   :  { %898 = vmatmul.mubr.msk.bf16.gmra.mxu0 %vm163_vm1, %v998_v61  ;;  %v1001_v61 = vld [vmem:[#allocation9 + $0x8] sm:$0xff]  }
  0x4c   :  { %901 = vmatprep.mubr.msk.bf16.mxu0 %vm163_vm1, %v999_v62  ;;  %v1002_v62 = vld [vmem:[#allocation9] sm:$0xff]  }
  0x53   :  { %902 = vmatmul.mubr.msk.bf16.gmra.mxu0 %vm163_vm1, %v1000_v63 }
  0x54   :  { %941 = vmatprep.mubr.msk.bf16.mxu0 %vm1150_vm0, %v1149_v0 }
  0xfb   :  { %v891_v9 = vpop.f32.mrf.mxu0  ;;  %v352_v12 = vpop.f32.mrf.mxu1 }
  0xfc   :  { %v231_v10 = vadd.f32 %v891_v9, %v1241_v8 }
  0xfd   :  { %v222_v11 = vpop.f32.mrf.mxu0  ;;  %v911_v15 = vpop.f32.mrf.mxu1 }
  0xfe   :  { %287 = vst.msk [vmem:[#allocation2 + $0x10] sm:$0xff] %vm163_vm1, %v231_v10  ;;  %v223_v13 = vadd.f32 %v1241_v8, %v222_v11 }
  0xff   :  { %v892_v14 = vpop.f32.mrf.mxu0  ;;  %v355_v18 = vpop.f32.mrf.mxu1 }
 0x100   :  { %285 = vst.msk [vmem:[#allocation2] sm:$0xff] %vm163_vm1, %v223_v13  ;;  %v234_v16 = vadd.f32 %v892_v14, %v1241_v8 }
 0x101   :  { %v225_v17 = vpop.f32.mrf.mxu0  ;;  %v912_v20 = vpop.f32.mrf.mxu1 }
 0x102   :  { %288 = vst.msk [vmem:[#allocation2 + $0x18] sm:$0xff] %vm163_vm1, %v234_v16  ;;  %v226_v19 = vadd.f32 %v1241_v8, %v225_v17 }
 0x103   :  { %v895_v41 = vpop.f32.mrf.mxu0 }
 0x104   :  { %286 = vst.msk [vmem:[#allocation2 + $0x8] sm:$0xff] %vm163_vm1, %v226_v19  ;;  %v247_v42 = vadd.f32 %v895_v41, %v1241_v8 }
 0x105   :  { %v365_v31 = vld [vmem:[#allocation2 + $0x10] sm:$0xff]  ;;  %v238_v43 = vpop.f32.mrf.mxu0 }
 0x106   :  { %291 = vst.msk [vmem:[#allocation2 + $0x30] sm:$0xff] %vm163_vm1, %v247_v42  ;;  %v239_v44 = vadd.f32 %v1241_v8, %v238_v43 }
 0x107   :  { %v301_v21 = vld [vmem:[#allocation2] sm:$0xff]  ;;  %v896_v45 = vpop.f32.mrf.mxu0 }
 0x108   :  { %v359_v22 = vadd.f32 %v352_v12, %v301_v21  ;;  %289 = vst.msk [vmem:[#allocation2 + $0x20] sm:$0xff] %vm163_vm1, %v239_v44  ;;  %v250_v46 = vadd.f32 %v896_v45, %v1241_v8 }
 0x109   :  { %v366_v34 = vld [vmem:[#allocation2 + $0x18] sm:$0xff]  ;;  %v241_v47 = vpop.f32.mrf.mxu0 }
 0x10a   :  { %1003 = vtanh.f32 %v359_v22  ;;  %292 = vst.msk [vmem:[#allocation2 + $0x38] sm:$0xff] %vm163_vm1, %v250_v46  ;;  %v242_v48 = vadd.f32 %v1241_v8, %v241_v47 }
 0x10b   :  { %v302_v23 = vld [vmem:[#allocation2 + $0x8] sm:$0xff]  ;;  %v899_v15 = vpop.f32.mrf.mxu0 }
 0x10c   :  { %v360_v24 = vadd.f32 %v355_v18, %v302_v23  ;;  %290 = vst.msk [vmem:[#allocation2 + $0x28] sm:$0xff] %vm163_vm1, %v242_v48  ;;  %v263_v16 = vadd.f32 %v899_v15, %v1241_v8 }
 0x10d   :  { %v469_v2 = vld [vmem:[#allocation2 + $0x30] sm:$0xff]  ;;  %v254_v17 = vpop.f32.mrf.mxu0 }
 0x10e   :  { %1005 = vtanh.f32 %v360_v24  ;;  %295 = vst.msk [vmem:[#allocation2 + $0x50] sm:$0xff] %vm163_vm1, %v263_v16  ;;  %v255_v18 = vadd.f32 %v1241_v8, %v254_v17 }
 0x10f   :  { %v417_v51 = vld [vmem:[#allocation2 + $0x20] sm:$0xff]  ;;  %v900_v19 = vpop.f32.mrf.mxu0 }
 0x110   :  { %293 = vst.msk [vmem:[#allocation2 + $0x40] sm:$0xff] %vm163_vm1, %v255_v18  ;;  %v266_v20 = vadd.f32 %v900_v19, %v1241_v8 }
 0x111   :  { %v470_v7 = vld [vmem:[#allocation2 + $0x38] sm:$0xff]  ;;  %v257_v21 = vpop.f32.mrf.mxu0 }
 0x112   :  { %296 = vst.msk [vmem:[#allocation2 + $0x58] sm:$0xff] %vm163_vm1, %v266_v20  ;;  %v258_v22 = vadd.f32 %v1241_v8, %v257_v21 }
 0x113   :  { %v418_v54 = vld [vmem:[#allocation2 + $0x28] sm:$0xff]  ;;  %v903_v23 = vpop.f32.mrf.mxu0 }
 0x114   :  { %294 = vst.msk [vmem:[#allocation2 + $0x48] sm:$0xff] %vm163_vm1, %v258_v22  ;;  %v279_v24 = vadd.f32 %v903_v23, %v1241_v8 }
 0x115   :  { %v573_v42 = vld [vmem:[#allocation2 + $0x50] sm:$0xff] }
 0x116   :  { %299 = vst.msk [vmem:[#allocation2 + $0x70] sm:$0xff] %vm163_vm1, %v279_v24 }
 0x117   :  { %v1004_v25 = vpop.eup %1003 }
 0x119   :  { %v574_v45 = vld [vmem:[#allocation2 + $0x58] sm:$0xff] }
 0x11b   :  { %v1006_v26 = vpop.eup %1005 }
 0x11c   :  { %v363_v27 = vpack.c.bf16 %v1006_v26, %v1004_v25  ;;  %v270_v25 = vpop.f32.mrf.mxu0 }
 0x11d   :  { %v271_v26 = vadd.f32 %v1241_v8, %v270_v25 }
 0x11e   :  { %918 = vmatmul.mubr.msk.bf16.vlgmr.msra.gmra.mxu1 %vm163_vm1, %v363_v27  ;;  %v904_v27 = vpop.f32.mrf.mxu0 }
 0x11f   :  { %922 = vmatpush3.bf16.msra.mxu1 %v1217_v4  ;;  %925 = vmatprep.mubr.msk.bf16.mxu1 %vm1150_vm0, %v1149_v0  ;;  %297 = vst.msk [vmem:[#allocation2 + $0x60] sm:$0xff] %vm163_vm1, %v271_v26  ;;  %v282_v28 = vadd.f32 %v904_v27, %v1241_v8 }
 0x120   :  { %923 = vmatprep.subr.bf16.mxu1 %v1149_v0  ;;  %v273_v29 = vpop.f32.mrf.mxu0 }
 0x121   :  { %300 = vst.msk [vmem:[#allocation2 + $0x78] sm:$0xff] %vm163_vm1, %v282_v28 }
 0x123   :  { %924 = vmatpush3.bf16.msra.mxu1 %v1221_v6 }
 0x124   :  { %929 = vmatprep.subr.bf16.mxu1 %v1149_v0 }
 0x1de   :  { %v404_v30 = vpop.f32.mrf.mxu1 }
 0x1df   :  { %v411_v32 = vadd.f32 %v404_v30, %v365_v31  ;;  %v274_v30 = vadd.f32 %v1241_v8, %v273_v29 }
 0x1e0   :  { %v919_v33 = vpop.f32.mrf.mxu1 }
 0x1e1   :  { %1007 = vtanh.f32 %v411_v32  ;;  %298 = vst.msk [vmem:[#allocation2 + $0x68] sm:$0xff] %vm163_vm1, %v274_v30  ;;  %v521_v32 = vld [vmem:[#allocation2 + $0x40] sm:$0xff] }
 0x1e2   :  { %v407_v35 = vpop.f32.mrf.mxu1 }
 0x1e3   :  { %v412_v36 = vadd.f32 %v407_v35, %v366_v34  ;;  %v522_v35 = vld [vmem:[#allocation2 + $0x48] sm:$0xff] }
 0x1e4   :  { %v920_v37 = vpop.f32.mrf.mxu1 }
 0x1e5   :  { %1009 = vtanh.f32 %v412_v36 }
 0x1ee   :  { %v1008_v38 = vpop.eup %1007 }
 0x1f2   :  { %v1010_v39 = vpop.eup %1009 }
 0x1f3   :  { %v415_v40 = vpack.c.bf16 %v1010_v39, %v1008_v38 }
 0x1f5   :  { %926 = vmatmul.mubr.msk.bf16.vlgmr.msra.gmra.mxu1 %vm163_vm1, %v415_v40 }
 0x1f6   :  { %930 = vmatpush3.bf16.msra.mxu1 %v1217_v4  ;;  %933 = vmatprep.mubr.msk.bf16.mxu1 %vm1150_vm0, %v1149_v0 }
 0x1f7   :  { %931 = vmatprep.subr.bf16.mxu1 %v1149_v0 }
 0x1fa   :  { %932 = vmatpush3.bf16.msra.mxu1 %v1221_v6 }
 0x1fb   :  { %945 = vmatprep.subr.bf16.mxu1 %v1149_v0 }
 0x2b5   :  { %v456_v50 = vpop.f32.mrf.mxu1 }
 0x2b6   :  { %v463_v52 = vadd.f32 %v456_v50, %v417_v51 }
 0x2b7   :  { %v927_v53 = vpop.f32.mrf.mxu1 }
 0x2b8   :  { %1011 = vtanh.f32 %v463_v52 }
 0x2b9   :  { %v459_v55 = vpop.f32.mrf.mxu1 }
 0x2ba   :  { %v464_v56 = vadd.f32 %v459_v55, %v418_v54  ;;  %v626_v54 = vld [vmem:[#allocation2 + $0x68] sm:$0xff] }
 0x2bb   :  { %v928_v57 = vpop.f32.mrf.mxu1 }
 0x2bc   :  { %1013 = vtanh.f32 %v464_v56 }
 0x2c5   :  { %v1012_v58 = vpop.eup %1011 }
 0x2c9   :  { %v1014_v59 = vpop.eup %1013 }
 0x2ca   :  { %v467_v60 = vpack.c.bf16 %v1014_v59, %v1012_v58 }
 0x2cc   :  { %934 = vmatmul.mubr.msk.bf16.vlgmr.msra.gmra.mxu1 %vm163_vm1, %v467_v60 }
 0x2cd   :  { %946 = vmatpush3.bf16.msra.mxu1 %v1217_v4  ;;  %949 = vmatprep.mubr.msk.bf16.mxu1 %vm1150_vm0, %v1149_v0 }
 0x2ce   :  { %947 = vmatprep.subr.bf16.mxu1 %v1149_v0 }
 0x2d1   :  { %948 = vmatpush3.bf16.msra.mxu1 %v1221_v6 }
 0x2d2   :  { %961 = vmatprep.subr.bf16.mxu1 %v1149_v0 }
 0x38c   :  { %v508_v1 = vpop.f32.mrf.mxu1 }
 0x38d   :  { %v515_v3 = vadd.f32 %v508_v1, %v469_v2  ;;  %v677_v1 = vld [vmem:[#allocation2 + $0x70] sm:$0xff] }
 0x38e   :  { %v935_v5 = vpop.f32.mrf.mxu1 }
 0x38f   :  { %1015 = vtanh.f32 %v515_v3  ;;  %v678_v5 = vld [vmem:[#allocation2 + $0x78] sm:$0xff] }
 0x390   :  { %v511_v9 = vpop.f32.mrf.mxu1 }
 0x391   :  { %v516_v10 = vadd.f32 %v511_v9, %v470_v7 }
 0x392   :  { %v936_v11 = vpop.f32.mrf.mxu1 }
 0x393   :  { %1017 = vtanh.f32 %v516_v10 }
 0x39c   :  { %v1016_v12 = vpop.eup %1015 }
 0x3a0   :  { %v1018_v13 = vpop.eup %1017 }
 0x3a1   :  { %v519_v14 = vpack.c.bf16 %v1018_v13, %v1016_v12 }
 0x3a3   :  { %942 = vmatmul.mubr.msk.bf16.vlgmr.msra.gmra.mxu0 %vm163_vm1, %v519_v14 }
 0x3a4   :  { %954 = vmatpush3.bf16.msra.mxu0 %v1217_v4  ;;  %957 = vmatprep.mubr.msk.bf16.mxu0 %vm1150_vm0, %v1149_v0 }
 0x3a5   :  { %955 = vmatprep.subr.bf16.mxu0 %v1149_v0 }
 0x3a8   :  { %956 = vmatpush3.bf16.msra.mxu0 %v1221_v6 }
 0x3a9   :  { %969 = vmatprep.subr.bf16.mxu0 %v1149_v0 }
 0x463   :  { %v560_v31 = vpop.f32.mrf.mxu0 }
 0x464   :  { %v567_v33 = vadd.f32 %v560_v31, %v521_v32 }
 0x465   :  { %v943_v34 = vpop.f32.mrf.mxu0 }
 0x466   :  { %1019 = vtanh.f32 %v567_v33 }
 0x467   :  { %v563_v36 = vpop.f32.mrf.mxu0 }
 0x468   :  { %v568_v37 = vadd.f32 %v563_v36, %v522_v35 }
 0x469   :  { %v944_v38 = vpop.f32.mrf.mxu0 }
 0x46a   :  { %1021 = vtanh.f32 %v568_v37 }
 0x473   :  { %v1020_v39 = vpop.eup %1019 }
 0x477   :  { %v1022_v40 = vpop.eup %1021 }
 0x478   :  { %v571_v41 = vpack.c.bf16 %v1022_v40, %v1020_v39 }
 0x47a   :  { %950 = vmatmul.mubr.msk.bf16.vlgmr.msra.gmra.mxu1 %vm163_vm1, %v571_v41 }
 0x47b   :  { %962 = vmatpush3.bf16.msra.mxu1 %v1217_v4  ;;  %965 = vmatprep.mubr.msk.bf16.mxu1 %vm1150_vm0, %v1149_v0 }
 0x47c   :  { %963 = vmatprep.subr.bf16.mxu1 %v1149_v0 }
 0x47f   :  { %964 = vmatpush3.bf16.msra.mxu1 %v1221_v6  ;;  %v625_v6 = vld [vmem:[#allocation2 + $0x60] sm:$0xff] }
 0x53a   :  { %v612_v8 = vpop.f32.mrf.mxu1 }
 0x53b   :  { %v619_v43 = vadd.f32 %v612_v8, %v573_v42 }
 0x53c   :  { %v951_v44 = vpop.f32.mrf.mxu1 }
 0x53d   :  { %1023 = vtanh.f32 %v619_v43 }
 0x53e   :  { %v615_v46 = vpop.f32.mrf.mxu1 }
 0x53f   :  { %v620_v47 = vadd.f32 %v615_v46, %v574_v45 }
 0x540   :  { %v952_v48 = vpop.f32.mrf.mxu1 }
 0x541   :  { %1025 = vtanh.f32 %v620_v47 }
 0x54a   :  { %v1024_v49 = vpop.eup %1023 }
 0x54e   :  { %v1026_v50 = vpop.eup %1025 }
 0x54f   :  { %v623_v4 = vpack.c.bf16 %v1026_v50, %v1024_v49 }
 0x551   :  { %958 = vmatmul.mubr.msk.bf16.vlgmr.msra.gmra.mxu0 %vm163_vm1, %v623_v4 }
 0x552   :  { %973 = vmatprep.mubr.msk.bf16.mxu0 %vm1150_vm0, %v1149_v0  ;;  %970 = vmatpush3.bf16.msra.mxu0 %v1001_v61 }
 0x553   :  { %971 = vmatprep.subr.bf16.mxu0 %v1149_v0  ;;  %v844_v0 = vld [vmem:[%s1334_s5] ss:$0 sm:$0xff] }
 0x556   :  { %972 = vmatpush3.bf16.msra.mxu0 %v1002_v62 }
 0x611   :  { %v664_v51 = vpop.f32.mrf.mxu0 }
 0x612   :  { %v671_v52 = vadd.f32 %v664_v51, %v625_v6 }
 0x613   :  { %v959_v53 = vpop.f32.mrf.mxu0 }
 0x614   :  { %1027 = vtanh.f32 %v671_v52 }
 0x615   :  { %v667_v55 = vpop.f32.mrf.mxu0 }
 0x616   :  { %v672_v56 = vadd.f32 %v667_v55, %v626_v54 }
 0x617   :  { %v960_v57 = vpop.f32.mrf.mxu0 }
 0x618   :  { %1029 = vtanh.f32 %v672_v56 }
 0x621   :  { %v1028_v58 = vpop.eup %1027 }
 0x625   :  { %v1030_v59 = vpop.eup %1029 }
 0x626   :  { %v675_v60 = vpack.c.bf16 %v1030_v59, %v1028_v58 }
 0x628   :  { %966 = vmatmul.mubr.msk.bf16.vlgmr.msra.gmra.mxu1 %vm163_vm1, %v675_v60 }
 0x6e8   :  { %v716_v63 = vpop.f32.mrf.mxu1 }
 0x6e9   :  { %v723_v2 = vadd.f32 %v716_v63, %v677_v1 }
 0x6ea   :  { %v967_v3 = vpop.f32.mrf.mxu1 }
 0x6eb   :  { %1031 = vtanh.f32 %v723_v2 }
 0x6ec   :  { %v719_v7 = vpop.f32.mrf.mxu1 }
 0x6ed   :  { %v724_v9 = vadd.f32 %v719_v7, %v678_v5 }
 0x6ee   :  { %v968_v10 = vpop.f32.mrf.mxu1 }
 0x6ef   :  { %1033 = vtanh.f32 %v724_v9 }
 0x6f8   :  { %v1032_v11 = vpop.eup %1031 }
 0x6fc   :  { %v1034_v12 = vpop.eup %1033 }
 0x6fd   :  { %v727_v13 = vpack.c.bf16 %v1034_v12, %v1032_v11 }
 0x6ff   :  { %974 = vmatmul.mubr.msk.bf16.vlgmr.msra.gmra.mxu0 %vm163_vm1, %v727_v13 }
 0x7bf   :  { %v788_v14 = vpop.f32.mrf.mxu0 }
 0x7c0   :  { %v789_v15 = vadd.f32 %v844_v0, %v788_v14 }
 0x7c1   :  { %v975_v16 = vpop.f32.mrf.mxu0 }
 0x7c2   :  { %795 = vst [vmem:[#allocation11] sm:$0xff] %v789_v15 }
 0x7c3   :  { %v791_v17 = vpop.f32.mrf.mxu0 }
 0x7c4   :  { %v792_v18 = vadd.f32 %v844_v0, %v791_v17 }
 0x7c5   :  { %v976_v19 = vpop.f32.mrf.mxu0 }
 0x7c6   :  { %796 = vst [vmem:[#allocation11 + $0x8] sm:$0xff] %v792_v18 }
 0x7c7   :  { %1126 = shalt.err (!%p1123_p10)
}
 0x7c8   :  { %s1153_s21 = smov 128   ;;  %s1154_s5 = smov 8  }
 0x7c9   :  { %808 = dma.vmem_to_hbm [thread:$0]  %s803_s19, 256, %s1335_s6, [#allocation5], %s1153_s21, %s1153_s21, %s1154_s5  }
 0x7ca   :  { %1141 = dma.done.wait [#allocation5], 256  }
 0x7cb   :  { %1142 = vsyncadd [#allocation5], 4294967040 }
 0x7cc   :  { %812 = vsyncpa [#allocation4], 1 }
 0x7cd   :  { %813 = vsyncpa [#allocation7], 1 }
 0x7ce   :  { %814 = vsyncpa [#allocation10], 1 }
 0x7cf   :  { %815 = vsyncpa [#allocation5], 1 }

</bundles_post_ra>
